<compile_context>
chip_gen: v7x
topology: tpu7x:2x2x1
jax: 0.10.0
libtpu: 0.0.40
codegen_flags: <defaults>
</compile_context>

<pallas_src>
import math
import functools

import jax
import jax.numpy as jnp
import numpy as np
from jax.experimental import pallas as pl
from jax.experimental.pallas import tpu as pltpu

# ----------------------------- small config ---------------------------------
B, S = 2, 8            # batch, sequence length
H = 32                 # hidden_size
NH = 4                 # num_attention_heads
NKV = 4                # num_key_value_heads (== NH -> n_rep == 1)
DH = H // NH           # head_dim
INTER = 64             # intermediate_size
NUM_LAYERS = 4         # num_hidden_layers
SCALE_DEPTH = 1.4
RMS_EPS = 1e-6
ROPE_THETA = 10000.0
RESID_SCALE = SCALE_DEPTH / math.sqrt(NUM_LAYERS)
N = B * S
LANES = 128


# ------------------------------ fused kernel --------------------------------
def _decoder_layer_kernel(x_ref, slab_ref, o_ref, *, layout, eps):
    f32 = jnp.float32

    def cst(name):
        r0, c0, nr, nc = layout[name]          # static python ints -> free slices
        return slab_ref[r0:r0 + nr, c0:c0 + nc]

    x = x_ref[...].astype(f32)                                   # [N, H]

    def rmsnorm(v, w):
        var = jnp.mean(v * v, axis=-1, keepdims=True)
        # NOTE: reference MiniCPMRMSNorm *adds* the weight.
        return v * jax.lax.rsqrt(var + eps) + w

    # ---------------- self-attention block ----------------
    hs = rmsnorm(x, cst("ln1"))                                  # [N, H]

    # Packed projection: [q | k | rot(q) | rot(k)] in one [N,H]@[H,128] matmul
    # (rotate_half and 1/sqrt(DH) folded into the weights at pack time).
    qkr = jnp.dot(hs, cst("w_qkrot"), preferred_element_type=f32)   # [N, 128]
    v = jnp.dot(hs, cst("wv"), preferred_element_type=f32)          # [N, H]

    # RoPE (fp32): q||k * cos + rot(q)||rot(k) * sin  -- pure VPU work.
    qk = qkr[:, :2 * H] * cst("cos2") + qkr[:, 2 * H:] * cst("sin2")  # [N, 2H]
    q = qk[:, :H]
    k = qk[:, H:]

    # Block-diagonal (per-head) K^T / V built with a precomputed 0/1 head mask.
    vmask = cst("vmask")                                         # [NH*N, H]
    kbd_t = jnp.concatenate([k] * NH, axis=0) * vmask            # [NH*N, H]
    vbd = jnp.concatenate([v] * NH, axis=0) * vmask              # [NH*N, H]

    # Scores for ALL (batch, head) pairs in one matmul; rhs is transposed inside
    # the MXU (contract last dims of both operands -- no explicit k^T).
    s = jax.lax.dot_general(q, kbd_t, (((1,), (1,)), ((), ())),
                            preferred_element_type=f32)          # [N, NH*N]

    keep = cst("keep")                                           # same-batch 0/1
    m = jnp.max(s - (1.0 - keep) * 1e30, axis=-1, keepdims=True)
    p = jnp.exp(s - m) * keep                                    # masked exp

    num = jnp.dot(p, vbd, preferred_element_type=f32)            # [N, H]
    den = jnp.dot(p, vmask, preferred_element_type=f32)          # per-head sums
    attn = num * pl.reciprocal(den, approx=True)                 # softmax(P) @ V

    attn = jnp.dot(attn, cst("wo"), preferred_element_type=f32)  # resid scale folded
    h1 = x + attn                                                # scaled residual

    # ---------------- MLP block ----------------
    hs2 = rmsnorm(h1, cst("ln2"))
    gu = jnp.dot(hs2, cst("wgu"), preferred_element_type=f32)    # [N, 2*INTER]=128
    prod = gu[:, :INTER] * gu[:, INTER:]
    act = prod * jax.nn.sigmoid(prod)                            # silu(gate*up) per spec
    down = jnp.dot(act, cst("wd"), preferred_element_type=f32)   # resid scale folded
    o_ref[...] = (h1 + down).astype(o_ref.dtype)


# ------------------------------ host-side packing ----------------------------
def make_rope_tables(seq_len, dim, theta):
    inv_freq = 1.0 / (theta ** (jnp.arange(0, dim, 2, dtype=jnp.float32) / dim))
    t = jnp.arange(seq_len, dtype=jnp.float32)
    freqs = jnp.outer(t, inv_freq)
    emb = jnp.concatenate([freqs, freqs], axis=-1)
    return jnp.cos(emb), jnp.sin(emb)                            # each [S, DH]


def _rotate_half_matrix(dim):
    """R such that x @ R == rotate_half(x) for a single head of width dim."""
    half = dim // 2
    r = np.zeros((dim, dim), dtype=np.float32)
    for j in range(half):
        r[j + half, j] = -1.0       # out[:, j]      = -x[:, j+half]
        r[j, j + half] = 1.0        # out[:, j+half] =  x[:, j]
    return r


def pack_constants(params, cos, sin):
    """One-time packing of all constants into a single lane-dense f32 slab."""
    scale = 1.0 / math.sqrt(DH)
    R = np.kron(np.eye(NH, dtype=np.float32), _rotate_half_matrix(DH))  # [H, H]

    wq = np.asarray(params["wq"], np.float32) * scale    # fold 1/sqrt(DH)
    wk = np.asarray(params["wk"], np.float32)
    wv = np.asarray(params["wv"], np.float32)
    # [q | k | rot(q) | rot(k)]  -> one 128-lane projection
    w_qkrot = np.concatenate([wq, wk, wq @ R, wk @ R], axis=1)          # [H, 128]

    wo = np.asarray(params["wo"], np.float32) * RESID_SCALE             # fold resid
    wgu = np.concatenate([np.asarray(params["wg"], np.float32),
                          np.asarray(params["wu"], np.float32)], axis=1)  # [H, 128]
    wd = np.asarray(params["wd"], np.float32) * RESID_SCALE             # fold resid

    cos_np = np.asarray(cos, np.float32)
    sin_np = np.asarray(sin, np.float32)
    cos2 = np.tile(cos_np, (B, 2 * NH))                                 # [N, 2H]
    sin2 = np.tile(sin_np, (B, 2 * NH))                                 # [N, 2H]

    # same-batch keep mask, tiled over heads along lanes: [N, NH*N]
    rows = np.arange(N)
    same_batch = (rows[:, None] // S == rows[None, :] // S).astype(np.float32)
    keep = np.tile(same_batch, (1, NH))                                 # [N, NH*N]

    # head-selection mask for block-diagonal K^T / V (also the softmax
    # denominator map): [NH*N, H]
    vmask = np.zeros((NH * N, H), dtype=np.float32)
    for h in range(NH):
        vmask[h * N:(h + 1) * N, h * DH:(h + 1) * DH] = 1.0

    entries = {
        "ln1": np.asarray(params["ln1_w"], np.float32).reshape(1, H),
        "ln2": np.asarray(params["ln2_w"], np.float32).reshape(1, H),
        "cos2": cos2, "sin2": sin2, "keep": keep, "vmask": vmask,
        "w_qkrot": w_qkrot, "wv": wv, "wo": wo, "wgu": wgu, "wd": wd,
    }

    layout = {}
    blocks = []
    row = 0
    for name, arr in entries.items():
        nr, nc = arr.shape
        pad_r = (-nr) % 8                      # keep every start 8-row aligned
        block = np.zeros((nr + pad_r, LANES), dtype=np.float32)
        block[:nr, :nc] = arr
        layout[name] = (row, 0, nr, nc)
        blocks.append(block)
        row += nr + pad_r
    slab = np.concatenate(blocks, axis=0)      # [320, 128] f32 (~160 KB)
    return jnp.asarray(slab), layout


# ------------------------------ wrapper --------------------------------------
def decoder_layer(x, slab, layout):
    b, s, h = x.shape
    x2 = x.reshape(b * s, h)
    kernel = functools.partial(_decoder_layer_kernel, layout=layout, eps=RMS_EPS)
    out2 = pl.pallas_call(
        kernel,
        out_shape=jax.ShapeDtypeStruct((b * s, h), x.dtype),
        in_specs=[pl.BlockSpec(memory_space=pltpu.MemorySpace.VMEM),
                  pl.BlockSpec(memory_space=pltpu.MemorySpace.VMEM)],
        out_specs=pl.BlockSpec(memory_space=pltpu.MemorySpace.VMEM),
        cost_estimate=pl.CostEstimate(flops=600_000, transcendentals=2_048,
                                      bytes_accessed=170_000),
    )(x2, slab)
    return out2.reshape(b, s, h)


# ------------------------- pure-JAX reference --------------------------------
def _ref_rms(x, w):
    var = jnp.mean(x.astype(jnp.float32) ** 2, axis=-1, keepdims=True)
    return (x * jax.lax.rsqrt(var + RMS_EPS)).astype(x.dtype) + w


def _rotate_half(x):
    half = x.shape[-1] // 2
    return jnp.concatenate([-x[..., half:], x[..., :half]], axis=-1)


def ref_layer(x, params, cos, sin):
    hi = jax.lax.Precision.HIGHEST
    b, s, h = x.shape
    residual = x
    hs = _ref_rms(x, params["ln1_w"])
    q = jnp.einsum("bsh,hd->bsd", hs, params["wq"], precision=hi)
    k = jnp.einsum("bsh,hd->bsd", hs, params["wk"], precision=hi)
    v = jnp.einsum("bsh,hd->bsd", hs, params["wv"], precision=hi)
    q = q.reshape(b, s, NH, DH).transpose(0, 2, 1, 3)
    k = k.reshape(b, s, NKV, DH).transpose(0, 2, 1, 3)
    v = v.reshape(b, s, NKV, DH).transpose(0, 2, 1, 3)
    c = cos[None, None]
    si = sin[None, None]
    q = q * c + _rotate_half(q) * si
    k = k * c + _rotate_half(k) * si
    scores = jnp.einsum("bnqd,bnkd->bnqk", q, k, precision=hi) / math.sqrt(DH)
    p = jax.nn.softmax(scores.astype(jnp.float32), axis=-1)
    attn = jnp.einsum("bnqk,bnkd->bnqd", p, v, precision=hi)
    attn = attn.transpose(0, 2, 1, 3).reshape(b, s, h)
    attn = jnp.einsum("bsh,hd->bsd", attn, params["wo"], precision=hi)
    hs = residual + attn * RESID_SCALE
    residual = hs
    hs2 = _ref_rms(hs, params["ln2_w"])
    g = jnp.einsum("bsh,hi->bsi", hs2, params["wg"], precision=hi)
    u = jnp.einsum("bsh,hi->bsi", hs2, params["wu"], precision=hi)
    inter = jax.nn.silu(g * u)                      # act_fn(gate(x)*up(x)) per spec
    down = jnp.einsum("bsi,ih->bsh", inter, params["wd"], precision=hi)
    return residual + down * RESID_SCALE


# ------------------------------- setup ---------------------------------------
def init_params(key):
    ks = jax.random.split(key, 7)
    std = 0.02
    # weights stored as [in, out] (transpose of torch's nn.Linear weight)
    return {
        "wq": jax.random.normal(ks[0], (H, NH * DH), jnp.float32) * std,
        "wk": jax.random.normal(ks[1], (H, NKV * DH), jnp.float32) * std,
        "wv": jax.random.normal(ks[2], (H, NKV * DH), jnp.float32) * std,
        "wo": jax.random.normal(ks[3], (NH * DH, H), jnp.float32) * std,
        "wg": jax.random.normal(ks[4], (H, INTER), jnp.float32) * std,
        "wu": jax.random.normal(ks[5], (H, INTER), jnp.float32) * std,
        "wd": jax.random.normal(ks[6], (INTER, H), jnp.float32) * std,
        "ln1_w": jnp.ones((H,), jnp.float32),
        "ln2_w": jnp.ones((H,), jnp.float32),
    }


if __name__ == "__main__":
    key = jax.random.PRNGKey(0)
    k_x, k_p = jax.random.split(key)
    x = jax.random.normal(k_x, (B, S, H), jnp.float32)
    params = init_params(k_p)
    cos, sin = make_rope_tables(S, DH, ROPE_THETA)

    slab, layout = pack_constants(params, cos, sin)   # one-time host-side packing
    out = decoder_layer(x, slab, layout)
    out = jax.block_until_ready(out)

    ref = jax.block_until_ready(ref_layer(x, params, cos, sin))
    np.testing.assert_allclose(np.asarray(out), np.asarray(ref), rtol=1e-2, atol=1e-2)

    print("KERNEL_OK")
</pallas_src>

<mosaic_0001>
module attributes {stable_mosaic.version = 11 : i64} {
  func.func @_decoder_layer_kernel(%arg0: memref<16x32xf32, #tpu.memory_space<vmem>>, %arg1: memref<320x128xf32, #tpu.memory_space<vmem>>, %arg2: memref<16x32xf32, #tpu.memory_space<vmem>>) attributes {dimension_semantics = [], scalar_prefetch = 0 : i64, scratch_operands = 0 : i64, tpu.core_type = #tpu.core_type<tc>} {
    %c0 = arith.constant 0 : index
    %c0_0 = arith.constant 0 : index
    %0 = vector.load %arg0[%c0, %c0_0] : memref<16x32xf32, #tpu.memory_space<vmem>>, vector<16x32xf32>
    %c0_1 = arith.constant 0 : index
    %c0_2 = arith.constant 0 : index
    %1 = vector.load %arg1[%c0_1, %c0_2] : memref<320x128xf32, #tpu.memory_space<vmem>>, vector<1x32xf32>
    %2 = arith.mulf %0, %0 : vector<16x32xf32>
    %cst = arith.constant dense<0.000000e+00> : vector<16xf32>
    %3 = vector.multi_reduction <add>, %2, %cst [1] : vector<16x32xf32> to vector<16xf32>
    %4 = vector.shape_cast %3 : vector<16xf32> to vector<16x1xf32>
    %cst_3 = arith.constant 3.200000e+01 : f32
    %5 = vector.broadcast %cst_3 : f32 to vector<16x1xf32>
    %6 = arith.divf %4, %5 : vector<16x1xf32>
    %cst_4 = arith.constant 9.99999997E-7 : f32
    %7 = vector.broadcast %cst_4 : f32 to vector<16x1xf32>
    %8 = arith.addf %6, %7 : vector<16x1xf32>
    %9 = math.rsqrt %8 : vector<16x1xf32>
    %10 = vector.broadcast %9 : vector<16x1xf32> to vector<16x32xf32>
    %11 = arith.mulf %0, %10 : vector<16x32xf32>
    %12 = vector.broadcast %1 : vector<1x32xf32> to vector<16x32xf32>
    %13 = arith.addf %11, %12 : vector<16x32xf32>
    %c128 = arith.constant 128 : index
    %c0_5 = arith.constant 0 : index
    %14 = vector.load %arg1[%c128, %c0_5] : memref<320x128xf32, #tpu.memory_space<vmem>>, vector<32x128xf32>
    %cst_6 = arith.constant dense<0.000000e+00> : vector<16x128xf32>
    %15 = tpu.matmul %13, %14, %cst_6 {dimension_numbers = #tpu.dot_dimension_numbers<[1], [0], [0], [1], [0, 0, 1, 1], [], []>} : vector<16x32xf32>, vector<32x128xf32>, vector<16x128xf32> -> vector<16x128xf32>
    %c160 = arith.constant 160 : index
    %c0_7 = arith.constant 0 : index
    %16 = vector.load %arg1[%c160, %c0_7] : memref<320x128xf32, #tpu.memory_space<vmem>>, vector<32x32xf32>
    %cst_8 = arith.constant dense<0.000000e+00> : vector<16x32xf32>
    %17 = tpu.matmul %13, %16, %cst_8 {dimension_numbers = #tpu.dot_dimension_numbers<[1], [0], [0], [1], [0, 0, 1, 1], [], []>} : vector<16x32xf32>, vector<32x32xf32>, vector<16x32xf32> -> vector<16x32xf32>
    %18 = vector.extract_strided_slice %15 {offsets = [0, 0], sizes = [16, 64], strides = [1, 1]} : vector<16x128xf32> to vector<16x64xf32>
    %c16 = arith.constant 16 : index
    %c0_9 = arith.constant 0 : index
    %19 = vector.load %arg1[%c16, %c0_9] : memref<320x128xf32, #tpu.memory_space<vmem>>, vector<16x64xf32>
    %20 = arith.mulf %18, %19 : vector<16x64xf32>
    %21 = vector.extract_strided_slice %15 {offsets = [0, 64], sizes = [16, 64], strides = [1, 1]} : vector<16x128xf32> to vector<16x64xf32>
    %c32 = arith.constant 32 : index
    %c0_10 = arith.constant 0 : index
    %22 = vector.load %arg1[%c32, %c0_10] : memref<320x128xf32, #tpu.memory_space<vmem>>, vector<16x64xf32>
    %23 = arith.mulf %21, %22 : vector<16x64xf32>
    %24 = arith.addf %20, %23 : vector<16x64xf32>
    %25 = vector.extract_strided_slice %24 {offsets = [0, 0], sizes = [16, 32], strides = [1, 1]} : vector<16x64xf32> to vector<16x32xf32>
    %26 = vector.extract_strided_slice %24 {offsets = [0, 32], sizes = [16, 32], strides = [1, 1]} : vector<16x64xf32> to vector<16x32xf32>
    %c64 = arith.constant 64 : index
    %c0_11 = arith.constant 0 : index
    %27 = vector.load %arg1[%c64, %c0_11] : memref<320x128xf32, #tpu.memory_space<vmem>>, vector<64x32xf32>
    %28 = tpu.concatenate %26, %26, %26, %26 in 0 : vector<16x32xf32>, vector<16x32xf32>, vector<16x32xf32>, vector<16x32xf32> -> vector<64x32xf32>
    %29 = arith.mulf %28, %27 : vector<64x32xf32>
    %30 = tpu.concatenate %17, %17, %17, %17 in 0 : vector<16x32xf32>, vector<16x32xf32>, vector<16x32xf32>, vector<16x32xf32> -> vector<64x32xf32>
    %31 = arith.mulf %30, %27 : vector<64x32xf32>
    %cst_12 = arith.constant dense<0.000000e+00> : vector<16x64xf32>
    %32 = tpu.matmul %25, %29, %cst_12 {dimension_numbers = #tpu.dot_dimension_numbers<[1], [1], [0], [0], [0, 0, 1, 0], [], []>} : vector<16x32xf32>, vector<64x32xf32>, vector<16x64xf32> -> vector<16x64xf32>
    %c48 = arith.constant 48 : index
    %c0_13 = arith.constant 0 : index
    %33 = vector.load %arg1[%c48, %c0_13] : memref<320x128xf32, #tpu.memory_space<vmem>>, vector<16x64xf32>
    %cst_14 = arith.constant 1.000000e+00 : f32
    %34 = vector.broadcast %cst_14 : f32 to vector<16x64xf32>
    %35 = arith.subf %34, %33 : vector<16x64xf32>
    %cst_15 = arith.constant 1.000000e+30 : f32
    %36 = vector.broadcast %cst_15 : f32 to vector<16x64xf32>
    %37 = arith.mulf %35, %36 : vector<16x64xf32>
    %38 = arith.subf %32, %37 : vector<16x64xf32>
    %cst_16 = arith.constant dense<0xFF800000> : vector<16xf32>
    %39 = vector.multi_reduction <maximumf>, %38, %cst_16 [1] : vector<16x64xf32> to vector<16xf32>
    %40 = vector.shape_cast %39 : vector<16xf32> to vector<16x1xf32>
    %41 = vector.broadcast %40 : vector<16x1xf32> to vector<16x64xf32>
    %42 = arith.subf %32, %41 : vector<16x64xf32>
    %43 = math.exp %42 : vector<16x64xf32>
    %44 = arith.mulf %43, %33 : vector<16x64xf32>
    %cst_17 = arith.constant dense<0.000000e+00> : vector<16x32xf32>
    %45 = tpu.matmul %44, %31, %cst_17 {dimension_numbers = #tpu.dot_dimension_numbers<[1], [0], [0], [1], [0, 0, 1, 1], [], []>} : vector<16x64xf32>, vector<64x32xf32>, vector<16x32xf32> -> vector<16x32xf32>
    %cst_18 = arith.constant dense<0.000000e+00> : vector<16x32xf32>
    %46 = tpu.matmul %44, %27, %cst_18 {dimension_numbers = #tpu.dot_dimension_numbers<[1], [0], [0], [1], [0, 0, 1, 1], [], []>} : vector<16x64xf32>, vector<64x32xf32>, vector<16x32xf32> -> vector<16x32xf32>
    %47 = tpu.reciprocal %46 {approx = true} : vector<16x32xf32> -> vector<16x32xf32>
    %48 = arith.mulf %45, %47 : vector<16x32xf32>
    %c192 = arith.constant 192 : index
    %c0_19 = arith.constant 0 : index
    %49 = vector.load %arg1[%c192, %c0_19] : memref<320x128xf32, #tpu.memory_space<vmem>>, vector<32x32xf32>
    %cst_20 = arith.constant dense<0.000000e+00> : vector<16x32xf32>
    %50 = tpu.matmul %48, %49, %cst_20 {dimension_numbers = #tpu.dot_dimension_numbers<[1], [0], [0], [1], [0, 0, 1, 1], [], []>} : vector<16x32xf32>, vector<32x32xf32>, vector<16x32xf32> -> vector<16x32xf32>
    %51 = arith.addf %0, %50 : vector<16x32xf32>
    %c8 = arith.constant 8 : index
    %c0_21 = arith.constant 0 : index
    %52 = vector.load %arg1[%c8, %c0_21] : memref<320x128xf32, #tpu.memory_space<vmem>>, vector<1x32xf32>
    %53 = arith.mulf %51, %51 : vector<16x32xf32>
    %cst_22 = arith.constant dense<0.000000e+00> : vector<16xf32>
    %54 = vector.multi_reduction <add>, %53, %cst_22 [1] : vector<16x32xf32> to vector<16xf32>
    %55 = vector.shape_cast %54 : vector<16xf32> to vector<16x1xf32>
    %cst_23 = arith.constant 3.200000e+01 : f32
    %56 = vector.broadcast %cst_23 : f32 to vector<16x1xf32>
    %57 = arith.divf %55, %56 : vector<16x1xf32>
    %cst_24 = arith.constant 9.99999997E-7 : f32
    %58 = vector.broadcast %cst_24 : f32 to vector<16x1xf32>
    %59 = arith.addf %57, %58 : vector<16x1xf32>
    %60 = math.rsqrt %59 : vector<16x1xf32>
    %61 = vector.broadcast %60 : vector<16x1xf32> to vector<16x32xf32>
    %62 = arith.mulf %51, %61 : vector<16x32xf32>
    %63 = vector.broadcast %52 : vector<1x32xf32> to vector<16x32xf32>
    %64 = arith.addf %62, %63 : vector<16x32xf32>
    %c224 = arith.constant 224 : index
    %c0_25 = arith.constant 0 : index
    %65 = vector.load %arg1[%c224, %c0_25] : memref<320x128xf32, #tpu.memory_space<vmem>>, vector<32x128xf32>
    %cst_26 = arith.constant dense<0.000000e+00> : vector<16x128xf32>
    %66 = tpu.matmul %64, %65, %cst_26 {dimension_numbers = #tpu.dot_dimension_numbers<[1], [0], [0], [1], [0, 0, 1, 1], [], []>} : vector<16x32xf32>, vector<32x128xf32>, vector<16x128xf32> -> vector<16x128xf32>
    %67 = vector.extract_strided_slice %66 {offsets = [0, 0], sizes = [16, 64], strides = [1, 1]} : vector<16x128xf32> to vector<16x64xf32>
    %68 = vector.extract_strided_slice %66 {offsets = [0, 64], sizes = [16, 64], strides = [1, 1]} : vector<16x128xf32> to vector<16x64xf32>
    %69 = arith.mulf %67, %68 : vector<16x64xf32>
    %70 = arith.negf %69 : vector<16x64xf32>
    %71 = math.exp %70 : vector<16x64xf32>
    %cst_27 = arith.constant 1.000000e+00 : f32
    %72 = vector.broadcast %cst_27 : f32 to vector<16x64xf32>
    %73 = arith.addf %72, %71 : vector<16x64xf32>
    %74 = arith.divf %72, %73 : vector<16x64xf32>
    %75 = arith.mulf %69, %74 : vector<16x64xf32>
    %c256 = arith.constant 256 : index
    %c0_28 = arith.constant 0 : index
    %76 = vector.load %arg1[%c256, %c0_28] : memref<320x128xf32, #tpu.memory_space<vmem>>, vector<64x32xf32>
    %cst_29 = arith.constant dense<0.000000e+00> : vector<16x32xf32>
    %77 = tpu.matmul %75, %76, %cst_29 {dimension_numbers = #tpu.dot_dimension_numbers<[1], [0], [0], [1], [0, 0, 1, 1], [], []>} : vector<16x64xf32>, vector<64x32xf32>, vector<16x32xf32> -> vector<16x32xf32>
    %78 = arith.addf %51, %77 : vector<16x32xf32>
    %c0_30 = arith.constant 0 : index
    %c0_31 = arith.constant 0 : index
    %79 = vector.load %arg2[%c0_30, %c0_31] : memref<16x32xf32, #tpu.memory_space<vmem>>, vector<16x32xf32>
    tpu.vector_store %arg2[%c0_30, %c0_31], %78 {strides = array<i32>} : memref<16x32xf32, #tpu.memory_space<vmem>>, vector<16x32xf32>,
    return
  }
}

</mosaic_0001>

<bundles_post_ra>
// kernel: tpu_custom_call.1
= control target key start
LH: loop header
LB: loop body
LE: loop exit
PB: predicated region body
PF: predicated region fallthrough
CT: control target
= control target key end

     0   :  { %7 = vsyncpa [#allocation3], 0  ;;  %s1579_s0 = inlined_call_operand.hbm [shape: f32[16,32], index: 0, kind: input, shape index: {}]   ;;  %s1580_s1 = inlined_call_operand.hbm [shape: f32[320,128], index: 1, kind: input, shape index: {}]   ;;  %s1581_s2 = inlined_call_operand.hbm [shape: f32[16,32], index: 2, kind: output, shape index: {}]  }
   0x1   :  { %8 = vsyncpa [#allocation6], 0 }
   0x2   :  { %9 = vsyncpa [#allocation4], 0  ;;  %s1387_s9 = smov [#allocation2]   ;;  %s1315_s13 = scalar_lea.hbm %s1579_s0, 256 }
   0x3   :  { %s15_s10 = sshll.u32 %s1387_s9, 4  ;;  %p1316_p0 = scmp.ne.s32.totalorder %s1579_s0, %s1315_s13  ;;  %s16_s10 = int_to_ptr.vmem [resolvable:$true] %s15_s10 }
   0x4   :  { %p1319_p1 = scmp.lt.u32.totalorder %s1315_s13, %s1579_s0 }
   0x6   :  { %p1321_p2 = pnand %p1319_p1, %p1316_p0 }
   0x8   :  { %1324 = shalt.err (!%p1321_p2)
}
   0x9   :  { %s1325_s18 = scalar_lea.vmem %s16_s10, 256  ;;  %p1330_p4 = scmp.lt.s32.totalorder %s16_s10, %s16_s10 }
   0xa   :  { %p1326_p3 = scmp.ne.s32.totalorder %s16_s10, %s1325_s18  ;;  %p1331_p5 = scmp.lt.s32.totalorder %s1325_s18, %s1325_s18 }
   0xc   :  { %p1332_p6 = por %p1331_p5, %p1330_p4 }
   0xe   :  { %p1333_p7 = pnand %p1332_p6, %p1326_p3 }
  0x10   :  { %1336 = shalt.err (!%p1333_p7)
}
  0x11   :  { %s1388_s19 = smov 128   ;;  %s1389_s20 = smov 8  }
  0x12   :  { %21 = dma.hbm_to_vmem [thread:$0]  %s1579_s0, 256, %s16_s10, [#allocation3], %s1388_s19, %s1388_s19, %s1389_s20  }
  0x13   :  { %s1390_s23 = smov [#allocation5]   ;;  %s1337_s27 = scalar_lea.hbm %s1580_s1, 5120 }
  0x14   :  { %s27_s24 = sshll.u32 %s1390_s23, 4  ;;  %p1338_p8 = scmp.ne.s32.totalorder %s1580_s1, %s1337_s27  ;;  %s28_s24 = int_to_ptr.vmem [resolvable:$true] %s27_s24 }
  0x15   :  { %p1341_p9 = scmp.lt.u32.totalorder %s1337_s27, %s1580_s1 }
  0x17   :  { %p1343_p10 = pnand %p1341_p9, %p1338_p8 }
  0x19   :  { %1346 = shalt.err (!%p1343_p10)
}
  0x1a   :  { %s1347_s4 = scalar_lea.vmem %s28_s24, 5120  ;;  %p1352_p12 = scmp.lt.s32.totalorder %s28_s24, %s28_s24 }
  0x1b   :  { %p1348_p11 = scmp.ne.s32.totalorder %s28_s24, %s1347_s4  ;;  %p1353_p13 = scmp.lt.s32.totalorder %s1347_s4, %s1347_s4 }
  0x1d   :  { %p1354_p0 = por %p1353_p13, %p1352_p12 }
  0x1f   :  { %p1355_p1 = pnand %p1354_p0, %p1348_p11 }
  0x21   :  { %1358 = shalt.err (!%p1355_p1)
}
  0x22   :  { %33 = dma.hbm_to_vmem [thread:$0]  %s1580_s1, 5120, %s28_s24, [#allocation6], %s1388_s19, %s1388_s19, %s1389_s20  }
  0x23   :  { %1381 = dma.done.wait [#allocation3], 256  }
  0x24   :  { %1382 = vsyncadd [#allocation3], 4294967040 }
  0x25   :  { %1383 = dma.done.wait [#allocation6], 5120  }
  0x26   :  { %1384 = vsyncadd [#allocation6], 4294962176  ;;  %v1440_v0 = vld [vmem:[#allocation2] sm:$0xff]  ;;  %vm45_vm0 = vcmask 261120   ;;  %v1442_v1 = vld [vmem:[#allocation2 + $0x8] sm:$0xff]  ;;  %s1391_s1 = smov 64  }
  0x27   :  { %v43_v2 = vmul.f32 %v1440_v0, %v1440_v0  ;;  %v44_v3 = vmul.f32 %v1442_v1, %v1442_v1  ;;  %v67_v6 = vld [vmem:[#allocation5 + $0x80] sm:$0xff]  ;;  %v68_v7 = vld [vmem:[#allocation5 + $0x88] sm:$0xff]  ;;  %v69_v8 = vld [vmem:[#allocation5 + $0x90] sm:$0xff]  ;;  %s1392_s6 = smov 32   ;;  %s1393_s7 = smov 96   ;;  %vm442_vm2 = vcmask 523264  }
  0x28   :  { %v1159_v9 = vpack.c.bf16 %v68_v7, %v67_v6  ;;  %v70_v10 = vld [vmem:[#allocation5 + $0x98] sm:$0xff]  ;;  %v152_v12 = vld [vmem:[#allocation5 + $0xa0] sm:$0xff]  ;;  %v153_v13 = vld [vmem:[#allocation5 + $0xa8] sm:$0xff]  ;;  %s1394_s8 = smov [#allocation7]  }
  0x29   :  { %v46_v4 = vsel %vm45_vm0, %v43_v2, 0.0  ;;  %v49_v5 = vsel %vm45_vm0, %v44_v3, 0.0  ;;  %v1163_v11 = vpack.c.bf16 %v70_v10, %v69_v8  ;;  %v1167_v14 = vpack.c.bf16 %v153_v13, %v152_v12  ;;  %v235_v15 = vld [vmem:[#allocation5 + $0x20] sm:$0xff]  ;;  %v236_v16 = vld [vmem:[#allocation5 + $0x28] sm:$0xff]  ;;  %v154_v28 = vld [vmem:[#allocation5 + $0xb0] sm:$0xff]  ;;  %s934_s9 = sshll.u32 %s1394_s8, 4  ;;  %s935_s9 = int_to_ptr.vmem [resolvable:$true] %s934_s9 }
  0x2a   :  { %47 = vadd.xlane.f32.xlu0 %v46_v4  ;;  %1160 = vmatprep.subr.bf16.mxu1 %v1159_v9  ;;  %v947_v24 = vld [vmem:[#allocation5] ss:$0 sm:$0xff]  ;;  %v155_v29 = vld [vmem:[#allocation5 + $0xb8] sm:$0xff]  ;;  %v1462_v40 = vld [vmem:[#allocation5 + $0x68] sm:$0xff]  ;;  %s1359_s10 = scalar_lea.vmem %s935_s9, 256  ;;  %p1364_p3 = scmp.lt.s32.totalorder %s935_s9, %s935_s9 }
  0x2b   :  { %1162 = vmatpush3.bf16.msra.mxu1 %v1159_v9  ;;  %239 = vrot.lane.b32.xlu1 %v235_v15, %s1391_s1  ;;  %v1171_v32 = vpack.c.bf16 %v155_v29, %v154_v28  ;;  %v1460_v39 = vld [vmem:[#allocation5 + $0x40] sm:$0xff]  ;;  %v1464_v41 = vld [vmem:[#allocation5 + $0x58] sm:$0xff]  ;;  %v1466_v42 = vld [vmem:[#allocation5 + $0x48] sm:$0xff]  ;;  %p1360_p2 = scmp.ne.s32.totalorder %s935_s9, %s1359_s10  ;;  %p1365_p4 = scmp.lt.s32.totalorder %s1359_s10, %s1359_s10 }
  0x2c   :  { %1164 = vmatprep.subr.bf16.mxu1 %v1163_v11  ;;  %v1468_v43 = vld [vmem:[#allocation5 + $0x78] sm:$0xff]  ;;  %v1472_v44 = vld [vmem:[#allocation5 + $0x60] sm:$0xff]  ;;  %v1474_v45 = vld [vmem:[#allocation5 + $0x70] sm:$0xff] }
  0x2d   :  { %v1476_v46 = vld [vmem:[#allocation5 + $0x50] sm:$0xff]  ;;  %v232_v3 = vld [vmem:[#allocation5 + $0x18] sm:$0xff]  ;;  %vm1503_vm1 = vmpackc.low %vm45_vm0, %vm45_vm0  ;;  %p1366_p5 = por %p1365_p4, %p1364_p3 }
  0x2e   :  { %50 = vadd.xlane.f32.xlu0 %v49_v5  ;;  %v231_v61 = vld [vmem:[#allocation5 + $0x10] sm:$0xff] }
  0x2f   :  { %1166 = vmatpush3.bf16.msra.mxu1 %v1163_v11  ;;  %241 = vrot.lane.b32.xlu1 %v236_v16, %s1391_s1  ;;  %p1367_p6 = pnand %p1366_p5, %p1360_p2 }
  0x30   :  { %1168 = vmatprep.subr.bf16.mxu1 %v1167_v14 }
  0x9d   :  { %v240_v33 = vpop.permute.xlu1 %239 }
  0xa1   :  { %v242_v34 = vpop.permute.xlu1 %241 }
  0xb7   :  { %v48_v17 = vpop.xlane.xlu0 %47 }
  0xb8   :  { %v53_v18 = vmul.f32 0.03125, %v48_v17 }
  0xba   :  { %v55_v19 = vadd.f32 1e-06, %v53_v18 }
  0xbb   :  { %v51_v20 = vpop.xlane.xlu0 %50 }
  0xbc   :  { %1291 = vrsqrt.f32 %v55_v19  ;;  %v54_v21 = vmul.f32 0.03125, %v51_v20 }
  0xbe   :  { %v56_v22 = vadd.f32 1e-06, %v54_v21 }
  0xc0   :  { %1293 = vrsqrt.f32 %v56_v22 }
  0xc6   :  { %v1292_v23 = vpop.eup %1291 }
  0xc7   :  { %v59_v25 = vmul.f32 %v1292_v23, %v1440_v0 }
  0xc9   :  { %v65_v26 = vadd.f32 %v947_v24, %v59_v25 }
  0xca   :  { %v1294_v27 = vpop.eup %1293 }
  0xcb   :  { %v60_v30 = vmul.f32 %v1294_v27, %v1442_v1  ;;  %1047 = vmatprep.mubr.msk.f32.mxu1 %vm45_vm0, %v65_v26 }
  0xcd   :  { %v66_v31 = vadd.f32 %v947_v24, %v60_v30  ;;  %v727_v30 = vld [vmem:[#allocation5 + $0xe0] sm:$0xff] }
  0xcf   :  { %1048 = vmatmul.mubr.msk.f32.vlgmr.msra.gmra.mrb[0].mxu1 %vm45_vm0, %v66_v31 }
  0xd0   :  { %1170 = vmatpush3.bf16.msra.mxu1 %v1167_v14  ;;  %1058 = vmatprep.mubr.msk.f32.mxu1 %vm45_vm0, %v65_v26 }
  0xd1   :  { %1172 = vmatprep.subr.bf16.mxu1 %v1171_v32 }
  0xd4   :  { %1174 = vmatpush3.bf16.msra.mxu1 %v1171_v32 }
  0xd7   :  { %1059 = vmatmul.mubr.msk.f32.vlgmr.msra.gmra.mrb[2].mxu1 %vm45_vm0, %v66_v31 }
 0x1a2   :  { %v1049_v35 = vpop.f32.mrb[0].mxu1 }
 0x1a3   :  { %v246_v36 = vmul.f32 %v1049_v35, %v242_v34  ;;  %v143_v37 = vpop.f32.mrb[1].mxu1  ;;  %v234_v6 = vmul.f32 %v1049_v35, %v232_v3 }
 0x1a4   :  { %v245_v38 = vmul.f32 %v240_v33, %v143_v37  ;;  %v233_v62 = vmul.f32 %v231_v61, %v143_v37 }
 0x1a5   :  { %251 = vrot.lane.b32.xlu1 %v246_v36, %s1391_s1 }
 0x1a6   :  { %249 = vrot.lane.b32.xlu0 %v245_v38, %s1391_s1 }
 0x1a9   :  { %273 = vrot.lane.b32.xlu1 %v1460_v39, %s1392_s6 }
 0x1aa   :  { %v1060_v47 = vpop.f32.mrb[2].mxu1  ;;  %283 = vrot.lane.b32.xlu0 %v1462_v40, %s1392_s6 }
 0x1ab   :  { %v308_v48 = vmul.f32 %v1060_v47, %v1464_v41  ;;  %v310_v49 = vmul.f32 %v1060_v47, %v1462_v40  ;;  %v222_v50 = vpop.f32.mrb[3].mxu1  ;;  %v306_v51 = vmul.f32 %v1060_v47, %v1466_v42  ;;  %v312_v52 = vmul.f32 %v1060_v47, %v1468_v43 }
 0x1ac   :  { %v305_v53 = vmul.f32 %v1460_v39, %v222_v50  ;;  %v309_v54 = vmul.f32 %v1472_v44, %v222_v50  ;;  %v311_v55 = vmul.f32 %v1474_v45, %v222_v50  ;;  %v307_v56 = vmul.f32 %v1476_v46, %v222_v50 }
 0x1ad   :  { %275 = vrot.lane.b32.xlu1 %v1466_v42, %s1392_s6 }
 0x1ae   :  { %287 = vrot.lane.b32.xlu0 %v1468_v43, %s1392_s6  ;;  %v1199_v57 = vpack.c.bf16 %v306_v51, %v305_v53  ;;  %v1203_v58 = vpack.c.bf16 %v308_v48, %v307_v56  ;;  %v1207_v59 = vpack.c.bf16 %v310_v49, %v309_v54  ;;  %v1211_v60 = vpack.c.bf16 %v312_v52, %v311_v55  ;;  %v435_v52 = vld [vmem:[#allocation5 + $0x38] sm:$0xff]  ;;  %v434_v53 = vld [vmem:[#allocation5 + $0x30] sm:$0xff] }
 0x1af   :  { %v437_v54 = vsub.f32 1.0, %v435_v52  ;;  %v436_v55 = vsub.f32 1.0, %v434_v53 }
 0x1b0   :  { %1200 = vmatprep.subr.bf16.mxu1 %v1199_v57 }
 0x1b1   :  { %1202 = vmatpush3.bf16.msra.mxu1 %v1199_v57  ;;  %277 = vrot.lane.b32.xlu1 %v1476_v46, %s1392_s6  ;;  %v439_v56 = vmul.f32 1e+30, %v437_v54  ;;  %v438_v57 = vmul.f32 1e+30, %v436_v55 }
 0x1b2   :  { %1204 = vmatprep.subr.bf16.mxu1 %v1203_v58 }
 0x1b5   :  { %1206 = vmatpush3.bf16.msra.mxu1 %v1203_v58  ;;  %279 = vrot.lane.b32.xlu1 %v1464_v41, %s1392_s6 }
 0x1b6   :  { %1208 = vmatprep.subr.bf16.mxu1 %v1207_v59 }
 0x1b9   :  { %1210 = vmatpush3.bf16.msra.mxu1 %v1207_v59  ;;  %281 = vrot.lane.b32.xlu1 %v1472_v44, %s1392_s6 }
 0x1ba   :  { %1212 = vmatprep.subr.bf16.mxu1 %v1211_v60 }
 0x1bd   :  { %1214 = vmatpush3.bf16.msra.mxu1 %v1211_v60  ;;  %285 = vrot.lane.b32.xlu1 %v1474_v45, %s1392_s6 }
 0x217   :  { %v252_v63 = vpop.permute.xlu1 %251 }
 0x218   :  { %v250_v2 = vpop.permute.xlu0 %249  ;;  %v256_v7 = vadd.f32 %v252_v63, %v234_v6 }
 0x219   :  { %v255_v4 = vadd.f32 %v250_v2, %v233_v62  ;;  %v1215_v2 = vpack.c.bf16 %v1466_v42, %v1460_v39  ;;  %v1223_v39 = vpack.c.bf16 %v1462_v40, %v1472_v44  ;;  %v1227_v42 = vpack.c.bf16 %v1468_v43, %v1474_v45 }
 0x21b   :  { %v274_v5 = vpop.permute.xlu1 %273  ;;  %1077 = vmatprep.mubr.msk.f32.mxu0 %vm45_vm0, %v255_v4  ;;  %1216 = vmatprep.subr.bf16.mxu1 %v1215_v2 }
 0x21c   :  { %v297_v9 = vmul.f32 %v274_v5, %v255_v4  ;;  %v284_v13 = vpop.permute.xlu0 %283 }
 0x21d   :  { %v302_v19 = vmul.f32 %v284_v13, %v256_v7  ;;  %v1219_v13 = vpack.c.bf16 %v1464_v41, %v1476_v46  ;;  %v617_v41 = vld [vmem:[#allocation5 + $0xc0] sm:$0xff]  ;;  %v618_v46 = vld [vmem:[#allocation5 + $0xc8] sm:$0xff] }
 0x21f   :  { %v276_v8 = vpop.permute.xlu1 %275 }
 0x220   :  { %v298_v10 = vmul.f32 %v276_v8, %v256_v7  ;;  %v288_v21 = vpop.permute.xlu0 %287 }
 0x221   :  { %v304_v24 = vmul.f32 %v288_v21, %v256_v7 }
 0x222   :  { %v1271_v11 = vpack.i.bf16 %v298_v10, %v297_v9 }
 0x223   :  { %v278_v12 = vpop.permute.xlu1 %277 }
 0x224   :  { %1272 = vrot.lane.b32.xlu1 %v1271_v11, %s1393_s7  ;;  %v299_v15 = vmul.f32 %v278_v12, %v255_v4 }
 0x227   :  { %v280_v14 = vpop.permute.xlu1 %279 }
 0x228   :  { %v300_v16 = vmul.f32 %v280_v14, %v256_v7  ;;  %v1231_v14 = vpack.c.bf16 %v618_v46, %v617_v41 }
 0x22a   :  { %v1276_v17 = vpack.i.bf16 %v300_v16, %v299_v15  ;;  %v619_v15 = vld [vmem:[#allocation5 + $0xd0] sm:$0xff]  ;;  %v620_v16 = vld [vmem:[#allocation5 + $0xd8] sm:$0xff] }
 0x22b   :  { %v282_v18 = vpop.permute.xlu1 %281 }
 0x22c   :  { %v301_v20 = vmul.f32 %v282_v18, %v255_v4  ;;  %1277 = vrot.lane.b32.xlu0 %v1276_v17, %s1393_s7  ;;  %v1235_v17 = vpack.c.bf16 %v620_v16, %v619_v15 }
 0x22e   :  { %v1281_v22 = vpack.i.bf16 %v302_v19, %v301_v20 }
 0x22f   :  { %v286_v23 = vpop.permute.xlu1 %285 }
 0x230   :  { %v303_v25 = vmul.f32 %v286_v23, %v255_v4  ;;  %1282 = vrot.lane.b32.xlu1 %v1281_v22, %s1393_s7 }
 0x232   :  { %v1286_v26 = vpack.i.bf16 %v304_v24, %v303_v25 }
 0x234   :  { %1287 = vrot.lane.b32.xlu0 %v1286_v26, %s1393_s7 }
 0x296   :  { %v1273_v27 = vpop.permute.xlu1 %1272 }
 0x297   :  { %v1275_v28 = vunpack.i.h.bf16 %v1273_v27  ;;  %v1274_v29 = vunpack.i.l.bf16 %v1273_v27 }
 0x299   :  { %v1175_v31 = vpack.c.bf16 %v1275_v28, %v1274_v29 }
 0x29b   :  { %1177 = vmatprep.subr.msk.bf16.mxu0 %vm1503_vm1, %v1175_v31 }
 0x29c   :  { %1180 = vmatpush3.bf16.xpose.msk.msra.mxu0 %vm1503_vm1, %v1175_v31  ;;  %v728_v31 = vld [vmem:[#allocation5 + $0xe8] sm:$0xff] }
 0x29e   :  { %v1278_v32 = vpop.permute.xlu0 %1277 }
 0x29f   :  { %v1280_v33 = vunpack.i.h.bf16 %v1278_v32  ;;  %v1279_v34 = vunpack.i.l.bf16 %v1278_v32  ;;  %v1239_v32 = vpack.c.bf16 %v728_v31, %v727_v30 }
 0x2a1   :  { %v1181_v35 = vpack.c.bf16 %v1280_v33, %v1279_v34  ;;  %v730_v33 = vld [vmem:[#allocation5 + $0xf8] sm:$0xff] }
 0x2a2   :  { %v1283_v36 = vpop.permute.xlu1 %1282 }
 0x2a3   :  { %v1285_v37 = vunpack.i.h.bf16 %v1283_v36  ;;  %v1284_v38 = vunpack.i.l.bf16 %v1283_v36  ;;  %1183 = vmatprep.subr.msk.bf16.mxu0 %vm1503_vm1, %v1181_v35 }
 0x2a4   :  { %1186 = vmatpush3.bf16.xpose.msk.msra.mxu0 %vm1503_vm1, %v1181_v35 }
 0x2a5   :  { %v1187_v47 = vpack.c.bf16 %v1285_v37, %v1284_v38 }
 0x2a6   :  { %v1288_v48 = vpop.permute.xlu0 %1287 }
 0x2a7   :  { %v1290_v49 = vunpack.i.h.bf16 %v1288_v48  ;;  %v1289_v50 = vunpack.i.l.bf16 %v1288_v48  ;;  %1189 = vmatprep.subr.msk.bf16.mxu0 %vm1503_vm1, %v1187_v47 }
 0x2a9   :  { %v1193_v51 = vpack.c.bf16 %v1290_v49, %v1289_v50  ;;  %v968_v50 = vld [vmem:[#allocation5 + $0x8] ss:$0 sm:$0xff] }
 0x2ac   :  { %1192 = vmatpush3.bf16.xpose.msk.msra.mxu0 %vm1503_vm1, %v1187_v47 }
 0x2ad   :  { %1195 = vmatprep.subr.msk.bf16.mxu0 %vm1503_vm1, %v1193_v51 }
 0x2b4   :  { %1198 = vmatpush3.bf16.xpose.msk.msra.mxu0 %vm1503_vm1, %v1193_v51 }
 0x2b5   :  { %1232 = vmatprep.subr.bf16.mxu0 %v1231_v14 }
 0x2bb   :  { %1078 = vmatmul.mubr.msk.f32.vlgmr.msra.gmra.mrb[0].mxu0 %vm45_vm0, %v256_v7 }
 0x2bc   :  { %1234 = vmatpush3.bf16.msra.mxu0 %v1231_v14 }
 0x2bd   :  { %1236 = vmatprep.subr.bf16.mxu0 %v1235_v17 }
 0x2c0   :  { %1238 = vmatpush3.bf16.msra.mxu0 %v1235_v17 }
 0x38e   :  { %v1079_v58 = vpop.f32.mrb[0].mxu0 }
 0x38f   :  { %v441_v59 = vsub.f32 %v1079_v58, %v439_v56  ;;  %v425_v60 = vpop.f32.mrb[1].mxu0 }
 0x390   :  { %v440_v61 = vsub.f32 %v425_v60, %v438_v57  ;;  %v836_v57 = vld [vmem:[#allocation5 + $0x100] sm:$0xff] }
 0x391   :  { %v446_v62 = vsel %vm442_vm2, %v441_v59, -inf }
 0x392   :  { %447 = vmax.xlane.f32.xlu0 %v446_v62  ;;  %v443_v63 = vsel %vm442_vm2, %v440_v61, -inf  ;;  %v839_v61 = vld [vmem:[#allocation5 + $0x118] sm:$0xff] }
 0x393   :  { %444 = vmax.xlane.f32.xlu1 %v443_v63  ;;  %v840_v63 = vld [vmem:[#allocation5 + $0x120] sm:$0xff] }
 0x41f   :  { %v448_v3 = vpop.xlane.xlu0 %447 }
 0x420   :  { %v450_v4 = vsub.f32 %v1079_v58, %v448_v3  ;;  %v445_v5 = vpop.xlane.xlu1 %444  ;;  %v837_v58 = vld [vmem:[#allocation5 + $0x108] sm:$0xff] }
 0x421   :  { %v449_v6 = vsub.f32 %v425_v60, %v445_v5  ;;  %v1247_v59 = vpack.c.bf16 %v837_v58, %v836_v57  ;;  %v838_v60 = vld [vmem:[#allocation5 + $0x110] sm:$0xff]  ;;  %v843_v5 = vld [vmem:[#allocation5 + $0x138] sm:$0xff] }
 0x422   :  { %v453_v7 = vmul.f32 1.442695, %v450_v4  ;;  %v1251_v62 = vpack.c.bf16 %v839_v61, %v838_v60  ;;  %v842_v4 = vld [vmem:[#allocation5 + $0x130] sm:$0xff] }
 0x423   :  { %v451_v8 = vmul.f32 1.442695, %v449_v6  ;;  %1248 = vmatprep.subr.bf16.mxu0 %v1247_v59  ;;  %v1259_v6 = vpack.c.bf16 %v843_v5, %v842_v4 }
 0x424   :  { %1295 = vpow2.f32 %v453_v7 }
 0x425   :  { %1297 = vpow2.f32 %v451_v8 }
 0x42e   :  { %v1296_v9 = vpop.eup %1295 }
 0x42f   :  { %v1298_v10 = vpop.eup %1297  ;;  %v456_v12 = vmul.f32 %v1296_v9, %v435_v52 }
 0x430   :  { %v455_v11 = vmul.f32 %v1298_v10, %v434_v53 }
 0x432   :  { %1096 = vmatprep.mubr.msk.f32.mxu1 %vm442_vm2, %v455_v11 }
 0x433   :  { %1097 = vmatmul.mubr.msk.f32.vlgmr.msra.gmra.mrb[4].mxu1 %vm442_vm2, %v456_v12 }
 0x434   :  { %1218 = vmatpush3.bf16.msra.mxu1 %v1215_v2  ;;  %1115 = vmatprep.mubr.msk.f32.mxu1 %vm442_vm2, %v455_v11  ;;  %v841_v2 = vld [vmem:[#allocation5 + $0x128] sm:$0xff] }
 0x435   :  { %1220 = vmatprep.subr.bf16.mxu1 %v1219_v13  ;;  %v1255_v3 = vpack.c.bf16 %v841_v2, %v840_v63 }
 0x438   :  { %1222 = vmatpush3.bf16.msra.mxu1 %v1219_v13 }
 0x439   :  { %1224 = vmatprep.subr.bf16.mxu1 %v1223_v39 }
 0x43c   :  { %1226 = vmatpush3.bf16.msra.mxu1 %v1223_v39 }
 0x43d   :  { %1228 = vmatprep.subr.bf16.mxu1 %v1227_v42 }
 0x440   :  { %1230 = vmatpush3.bf16.msra.mxu1 %v1227_v42 }
 0x441   :  { %1240 = vmatprep.subr.bf16.mxu1 %v1239_v32 }
 0x443   :  { %1116 = vmatmul.mubr.msk.f32.vlgmr.msra.gmra.mrb[6].mxu1 %vm442_vm2, %v456_v12 }
 0x444   :  { %1242 = vmatpush3.bf16.msra.mxu1 %v1239_v32 }
 0x506   :  { %v1098_v40 = vpop.f32.mrb[4].mxu1 }
 0x507   :  { %v529_v44 = vpop.f32.mrb[5].mxu1 }
 0x516   :  { %v1117_v18 = vpop.f32.mrb[6].mxu1 }
 0x517   :  { %1299 = vrcp.f32 %v1117_v18  ;;  %v604_v43 = vpop.f32.mrb[7].mxu1 }
 0x518   :  { %1301 = vrcp.f32 %v604_v43 }
 0x521   :  { %v1300_v45 = vpop.eup %1299 }
 0x522   :  { %v1302_v19 = vpop.eup %1301  ;;  %v616_v20 = vmul.f32 %v1300_v45, %v1098_v40 }
 0x523   :  { %v615_v21 = vmul.f32 %v1302_v19, %v529_v44 }
 0x525   :  { %1126 = vmatprep.mubr.msk.f32.mxu0 %vm45_vm0, %v615_v21 }
 0x526   :  { %1127 = vmatmul.mubr.msk.f32.vlgmr.msra.gmra.mrb[2].mxu0 %vm45_vm0, %v616_v20 }
 0x527   :  { %1250 = vmatpush3.bf16.msra.mxu0 %v1247_v59 }
 0x528   :  { %1252 = vmatprep.subr.bf16.mxu0 %v1251_v62 }
 0x52b   :  { %1254 = vmatpush3.bf16.msra.mxu0 %v1251_v62 }
 0x52c   :  { %1256 = vmatprep.subr.bf16.mxu0 %v1255_v3 }
 0x52f   :  { %1258 = vmatpush3.bf16.msra.mxu0 %v1255_v3 }
 0x530   :  { %1260 = vmatprep.subr.bf16.mxu0 %v1259_v6 }
 0x533   :  { %1262 = vmatpush3.bf16.msra.mxu0 %v1259_v6 }
 0x5f9   :  { %v1128_v22 = vpop.f32.mrb[2].mxu0 }
 0x5fa   :  { %v1541_v23 = vadd.f32 %v1128_v22, %v1442_v1  ;;  %v693_v24 = vpop.f32.mrb[3].mxu0  ;;  %v729_v1 = vld [vmem:[#allocation5 + $0xf0] sm:$0xff] }
 0x5fb   :  { %v1544_v25 = vadd.f32 %v693_v24, %v1440_v0  ;;  %v1243_v34 = vpack.c.bf16 %v730_v33, %v729_v1 }
 0x5fc   :  { %v706_v26 = vmul.f32 %v1541_v23, %v1541_v23 }
 0x5fd   :  { %v705_v27 = vmul.f32 %v1544_v25, %v1544_v25  ;;  %1244 = vmatprep.subr.bf16.mxu1 %v1243_v34 }
 0x5fe   :  { %v710_v28 = vsel %vm45_vm0, %v706_v26, 0.0  ;;  %1246 = vmatpush3.bf16.msra.mxu1 %v1243_v34 }
 0x5ff   :  { %711 = vadd.xlane.f32.xlu1 %v710_v28  ;;  %v707_v29 = vsel %vm45_vm0, %v705_v27, 0.0 }
 0x600   :  { %708 = vadd.xlane.f32.xlu0 %v707_v29 }
 0x68c   :  { %v712_v0 = vpop.xlane.xlu1 %711 }
 0x68d   :  { %v714_v35 = vmul.f32 0.03125, %v712_v0  ;;  %v709_v36 = vpop.xlane.xlu0 %708 }
 0x68e   :  { %v713_v37 = vmul.f32 0.03125, %v709_v36 }
 0x68f   :  { %v716_v38 = vadd.f32 1e-06, %v714_v35 }
 0x690   :  { %v715_v47 = vadd.f32 1e-06, %v713_v37 }
 0x691   :  { %1303 = vrsqrt.f32 %v716_v38 }
 0x692   :  { %1305 = vrsqrt.f32 %v715_v47 }
 0x69b   :  { %v1304_v48 = vpop.eup %1303 }
 0x69c   :  { %v1306_v49 = vpop.eup %1305  ;;  %v720_v51 = vmul.f32 %v1304_v48, %v1541_v23 }
 0x69d   :  { %v719_v52 = vmul.f32 %v1306_v49, %v1544_v25 }
 0x69e   :  { %v726_v54 = vadd.f32 %v968_v50, %v720_v51 }
 0x69f   :  { %v725_v53 = vadd.f32 %v968_v50, %v719_v52 }
 0x6a1   :  { %1137 = vmatprep.mubr.msk.f32.mxu1 %vm45_vm0, %v725_v53 }
 0x6a2   :  { %1138 = vmatmul.mubr.msk.f32.vlgmr.msra.gmra.mrb[8].mxu1 %vm45_vm0, %v726_v54 }
 0x775   :  { %v1139_v55 = vpop.f32.mrb[8].mxu1 }
 0x776   :  { %816 = vrot.lane.b32.xlu1 %v1139_v55, %s1391_s1  ;;  %v803_v56 = vpop.f32.mrb[9].mxu1 }
 0x777   :  { %814 = vrot.lane.b32.xlu0 %v803_v56, %s1391_s1 }
 0x7e8   :  { %v817_v7 = vpop.permute.xlu1 %816 }
 0x7e9   :  { %v821_v8 = vmul.f32 %v1139_v55, %v817_v7  ;;  %v815_v9 = vpop.permute.xlu0 %814 }
 0x7ea   :  { %v820_v10 = vmul.f32 %v815_v9, %v803_v56 }
 0x7eb   :  { %v972_v11 = vmul.f32 -1.442695, %v821_v8 }
 0x7ec   :  { %v971_v12 = vmul.f32 -1.442695, %v820_v10 }
 0x7ed   :  { %1307 = vpow2.f32 %v972_v11 }
 0x7ee   :  { %1309 = vpow2.f32 %v971_v12 }
 0x7f7   :  { %v1308_v13 = vpop.eup %1307 }
 0x7f8   :  { %v1310_v39 = vpop.eup %1309  ;;  %v829_v42 = vadd.f32 1.0, %v1308_v13 }
 0x7f9   :  { %v828_v41 = vadd.f32 1.0, %v1310_v39 }
 0x7fa   :  { %1311 = vrcp.f32 %v829_v42 }
 0x7fb   :  { %1313 = vrcp.f32 %v828_v41 }
 0x804   :  { %v1312_v46 = vpop.eup %1311 }
 0x805   :  { %v1314_v14 = vpop.eup %1313  ;;  %v835_v16 = vmul.f32 %v1312_v46, %v821_v8 }
 0x806   :  { %v834_v15 = vmul.f32 %v1314_v14, %v820_v10 }
 0x808   :  { %1156 = vmatprep.mubr.msk.f32.mxu0 %vm442_vm2, %v834_v15 }
 0x809   :  { %1157 = vmatmul.mubr.msk.f32.vlgmr.msra.gmra.mrb[4].mxu0 %vm442_vm2, %v835_v16 }
 0x8dc   :  { %v1158_v17 = vpop.f32.mrb[4].mxu0 }
 0x8dd   :  { %v926_v40 = vadd.f32 %v1158_v17, %v1541_v23  ;;  %v916_v44 = vpop.f32.mrb[5].mxu0 }
 0x8de   :  { %v925_v18 = vadd.f32 %v916_v44, %v1544_v25 }
 0x8df   :  { %928 = vst.msk [vmem:[#allocation7 + $0x8] sm:$0xff] %vm45_vm0, %v926_v40 }
 0x8e0   :  { %927 = vst.msk [vmem:[#allocation7] sm:$0xff] %vm45_vm0, %v925_v18 }
 0x8e1   :  { %1370 = shalt.err (!%p1367_p6)
}
 0x8e2   :  { %s1371_s13 = scalar_lea.hbm %s1581_s2, 256 }
 0x8e3   :  { %p1372_p7 = scmp.ne.s32.totalorder %s1581_s2, %s1371_s13  ;;  %p1375_p8 = scmp.lt.u32.totalorder %s1371_s13, %s1581_s2 }
 0x8e5   :  { %p1377_p9 = pnand %p1375_p8, %p1372_p7 }
 0x8e7   :  { %1380 = shalt.err (!%p1377_p9)
}
 0x8e8   :  { %940 = dma.vmem_to_hbm [thread:$0]  %s935_s9, 256, %s1581_s2, [#allocation4], %s1388_s19, %s1388_s19, %s1389_s20  }
 0x8e9   :  { %1385 = dma.done.wait [#allocation4], 256  }
 0x8ea   :  { %1386 = vsyncadd [#allocation4], 4294967040 }
 0x8eb   :  { %944 = vsyncpa [#allocation3], 1 }
 0x8ec   :  { %945 = vsyncpa [#allocation6], 1 }
 0x8ed   :  { %946 = vsyncpa [#allocation4], 1 }

</bundles_post_ra>
